<compile_context>
chip_gen: v7x
topology: tpu7x:2x2x1
jax: 0.10.0
libtpu: 0.0.40
codegen_flags: <defaults>
</compile_context>

<pallas_src>
import functools

import jax
import jax.numpy as jnp
from jax.experimental import pallas as pl
from jax.experimental.pallas import tpu as pltpu

_LANES = 128
_SUBLANES = 8
_MAX_TILE_ROWS = 2048  # 2048 * 128 * 4 B = 1 MiB f32 per input tile


def _round_up(x: int, m: int) -> int:
    return ((x + m - 1) // m) * m


def _n3_kernel(scales_ref, x_ref, out_ref, acc_ref, *, tile_rows):
    i = pl.program_id(0)  # which (tile_rows, 128) tile

    @pl.when(i == 0)
    def _init():
        acc_ref[...] = jnp.zeros_like(acc_ref)

    x = x_ref[...].astype(jnp.float32)            # (tile_rows, 128)
    ax = jnp.abs(x)
    cube = ax * ax * ax                           # |x|^3, pure VPU work

    # Fold row groups into one vreg-shaped (8,128) partial using vector adds
    # only (layout-preserving reshape: splits the sublane-major axis). The
    # single cross-lane reduce is deferred to the final grid step.
    partial = jnp.sum(
        cube.reshape(tile_rows // _SUBLANES, _SUBLANES, _LANES), axis=0)
    acc_ref[...] = acc_ref[...] + scales_ref[i] * partial

    @pl.when(i == pl.num_programs(0) - 1)
    def _finalize():
        out_ref[0, 0] = jnp.sum(acc_ref[...])


def n3(factors, weight: float):
    """JAX/Pallas equivalent of N3.forward(factors)."""
    tensors = [f for factor in factors for f in factor]
    if not tensors:                                   # guard: empty input
        return jnp.float32(0.0)

    common_dtype = jnp.result_type(*[f.dtype for f in tensors])

    # Tile size: big enough to amortize per-step overhead, capped at 1 MiB.
    rows_needed = max(max(pl.cdiv(f.size, _LANES), 1) for f in tensors)
    tile_rows = min(_MAX_TILE_ROWS, _round_up(rows_needed, _SUBLANES))
    tile_elems = tile_rows * _LANES

    # Lane-dense repack: flatten each tensor, zero-pad to a whole number of
    # (tile_rows, 128) tiles, concatenate all tiles along a leading axis and
    # record the per-tile scale (weight / f.shape[0]).
    blocks, scales = [], []
    for f in tensors:
        n_tiles = max(1, pl.cdiv(f.size, tile_elems))
        padded = n_tiles * tile_elems
        blocks.append(
            jnp.pad(jnp.ravel(f).astype(common_dtype), (0, padded - f.size))
            .reshape(n_tiles, tile_rows, _LANES))
        scales.extend([weight / f.shape[0]] * n_tiles)

    packed = jnp.concatenate(blocks, axis=0)          # (total_tiles, R, 128)
    scales = jnp.asarray(scales, dtype=jnp.float32)   # (total_tiles,)
    total_tiles = packed.shape[0]

    out = pl.pallas_call(
        functools.partial(_n3_kernel, tile_rows=tile_rows),
        out_shape=jax.ShapeDtypeStruct((1, 1), jnp.float32),
        grid_spec=pltpu.PrefetchScalarGridSpec(
            num_scalar_prefetch=0,
            grid=(total_tiles,),
            in_specs=[
                pl.BlockSpec(memory_space=pltpu.MemorySpace.SMEM),   # scales
                pl.BlockSpec((None, tile_rows, _LANES),
                             lambda i: (i, 0, 0)),                   # tiles
            ],
            out_specs=pl.BlockSpec(memory_space=pltpu.MemorySpace.SMEM),
            scratch_shapes=[pltpu.VMEM((_SUBLANES, _LANES), jnp.float32)],
        ),
        compiler_params=pltpu.CompilerParams(
            dimension_semantics=("arbitrary",)),
    )(scales, packed)
    return out[0, 0]


if __name__ == "__main__":
    key = jax.random.PRNGKey(0)
    keys = jax.random.split(key, 6)

    # Two factors of (h, r, t) embeddings; the second factor has a different
    # batch size to exercise per-tensor 1/f.shape[0] scaling and the per-tensor
    # padding path.
    factors = (
        (jax.random.normal(keys[0], (8, 32), jnp.float32),
         jax.random.normal(keys[1], (8, 32), jnp.float32),
         jax.random.normal(keys[2], (8, 32), jnp.float32)),
        (jax.random.normal(keys[3], (16, 32), jnp.float32),
         jax.random.normal(keys[4], (16, 32), jnp.float32),
         jax.random.normal(keys[5], (16, 32), jnp.float32)),
    )

    weight = 0.05
    out = n3(factors, weight)
    jax.block_until_ready(out)

    # Pure-JAX reference (mirrors the PyTorch N3.forward).
    ref = jnp.float32(0.0)
    for factor in factors:
        for f in factor:
            ref = ref + weight * jnp.sum(jnp.abs(f) ** 3) / f.shape[0]

    assert jnp.allclose(out, ref, rtol=1e-5, atol=1e-6), (out, ref)
    print("KERNEL_OK")
</pallas_src>

<mosaic_0001>
module attributes {stable_mosaic.version = 11 : i64} {
  func.func @_n3_kernel(%arg0: i32, %arg1: memref<6xf32, #tpu.memory_space<smem>>, %arg2: memref<1x8x128xf32, #tpu.memory_space<vmem>>, %arg3: memref<1x1xf32, #tpu.memory_space<smem>>, %arg4: memref<8x128xf32, #tpu.memory_space<vmem>>) attributes {dimension_semantics = [#tpu.dimension_semantics<arbitrary>], iteration_bounds = array<i64: 6>, scalar_prefetch = 0 : i64, scratch_operands = 1 : i64, tpu.core_type = #tpu.core_type<tc>, window_params = [{transform_indices = @transform_0, window_bounds = array<i64: 6>}, {transform_indices = @transform_1, window_bounds = array<i64: 1, 8, 128>}, {transform_indices = @transform_2, window_bounds = array<i64: 1, 1>}]} {
    %c0_i32 = arith.constant 0 : i32
    %0 = arith.cmpi eq, %arg0, %c0_i32 : i32
    %1 = arith.extui %0 : i1 to i32
    %c0_i32_0 = arith.constant 0 : i32
    %2 = arith.cmpi ne, %1, %c0_i32_0 : i32
    scf.if %2 {
      %cst_8 = arith.constant 0.000000e+00 : f32
      %20 = vector.broadcast %cst_8 : f32 to vector<8x128xf32>
      %c0_9 = arith.constant 0 : index
      %c0_10 = arith.constant 0 : index
      %21 = vector.load %arg4[%c0_9, %c0_10] : memref<8x128xf32, #tpu.memory_space<vmem>>, vector<8x128xf32>
      tpu.vector_store %arg4[%c0_9, %c0_10], %20 {strides = array<i32>} : memref<8x128xf32, #tpu.memory_space<vmem>>, vector<8x128xf32>,
    } else {
    }
    %c0 = arith.constant 0 : index
    %c0_1 = arith.constant 0 : index
    %c0_2 = arith.constant 0 : index
    %3 = vector.load %arg2[%c0, %c0_1, %c0_2] : memref<1x8x128xf32, #tpu.memory_space<vmem>>, vector<1x8x128xf32>
    %4 = vector.shape_cast %3 : vector<1x8x128xf32> to vector<8x128xf32>
    %5 = math.absf %4 : vector<8x128xf32>
    %6 = arith.mulf %5, %5 : vector<8x128xf32>
    %7 = arith.mulf %6, %5 : vector<8x128xf32>
    %8 = vector.shape_cast %7 : vector<8x128xf32> to vector<1x8x128xf32>
    %cst = arith.constant dense<0.000000e+00> : vector<8x128xf32>
    %9 = vector.multi_reduction <add>, %8, %cst [0] : vector<1x8x128xf32> to vector<8x128xf32>
    %c0_3 = arith.constant 0 : index
    %c0_4 = arith.constant 0 : index
    %10 = vector.load %arg4[%c0_3, %c0_4] : memref<8x128xf32, #tpu.memory_space<vmem>>, vector<8x128xf32>
    %11 = arith.index_cast %arg0 : i32 to index
    %12 = memref.load %arg1[%11] : memref<6xf32, #tpu.memory_space<smem>>
    %13 = vector.broadcast %12 : f32 to vector<8x128xf32>
    %14 = arith.mulf %13, %9 : vector<8x128xf32>
    %15 = arith.addf %10, %14 : vector<8x128xf32>
    %c0_5 = arith.constant 0 : index
    %c0_6 = arith.constant 0 : index
    %16 = vector.load %arg4[%c0_5, %c0_6] : memref<8x128xf32, #tpu.memory_space<vmem>>, vector<8x128xf32>
    tpu.vector_store %arg4[%c0_5, %c0_6], %15 {strides = array<i32>} : memref<8x128xf32, #tpu.memory_space<vmem>>, vector<8x128xf32>,
    %c5_i32 = arith.constant 5 : i32
    %17 = arith.cmpi eq, %arg0, %c5_i32 : i32
    %18 = arith.extui %17 : i1 to i32
    %c0_i32_7 = arith.constant 0 : i32
    %19 = arith.cmpi ne, %18, %c0_i32_7 : i32
    scf.if %19 {
      %c0_8 = arith.constant 0 : index
      %c0_9 = arith.constant 0 : index
      %20 = vector.load %arg4[%c0_8, %c0_9] : memref<8x128xf32, #tpu.memory_space<vmem>>, vector<8x128xf32>
      %21 = vector.shape_cast %20 : vector<8x128xf32> to vector<1x8x128xf32>
      %cst_10 = arith.constant dense<0.000000e+00> : vector<1xf32>
      %22 = vector.multi_reduction <add>, %21, %cst_10 [1, 2] : vector<1x8x128xf32> to vector<1xf32>
      %23 = vector.shape_cast %22 : vector<1xf32> to vector<1x1x1xf32>
      %24 = vector.extract %23[0, 0, 0] : f32 from vector<1x1x1xf32>
      %c0_11 = arith.constant 0 : index
      %c0_12 = arith.constant 0 : index
      %25 = memref.load %arg3[%c0_11, %c0_12] : memref<1x1xf32, #tpu.memory_space<smem>>
      memref.store %24, %arg3[%c0_11, %c0_12] : memref<1x1xf32, #tpu.memory_space<smem>>
    } else {
    }
    return
  }
  func.func @transform_0(%arg0: i32) -> i32 {
    %c0_i32 = arith.constant 0 : i32
    %c0_i32_0 = arith.constant 0 : i32
    return %c0_i32 : i32
  }
  func.func @transform_1(%arg0: i32) -> (i32, i32, i32) {
    %c0_i32 = arith.constant 0 : i32
    %c0_i32_0 = arith.constant 0 : i32
    %c0_i32_1 = arith.constant 0 : i32
    return %arg0, %c0_i32, %c0_i32_0 : i32, i32, i32
  }
  func.func @transform_2(%arg0: i32) -> (i32, i32) {
    %c0_i32 = arith.constant 0 : i32
    %c0_i32_0 = arith.constant 0 : i32
    %c0_i32_1 = arith.constant 0 : i32
    return %c0_i32, %c0_i32_0 : i32, i32
  }
}

</mosaic_0001>

<bundles_post_ra>
// kernel: tpu_custom_call.1
= control target key start
LH: loop header
LB: loop body
LE: loop exit
PB: predicated region body
PF: predicated region fallthrough
CT: control target
= control target key end

     0   :  { %7 = vsyncpa [#allocation5], 0  ;;  %s617_s0 = inlined_call_operand.hbm [shape: f32[6], index: 0, kind: input, shape index: {}]   ;;  %s618_s1 = inlined_call_operand.hbm [shape: f32[6,8,128], index: 1, kind: input, shape index: {}]   ;;  %s619_s2 = inlined_call_operand.hbm [shape: f32[1,1], index: 2, kind: output, shape index: {}]  }
   0x1   :  { %8 = vsyncpa [#allocation4], 0 }
   0x2   :  { %10 = vsyncpa [#allocation4 + $0x1], 0 }
   0x3   :  { %11 = vsyncpa [#allocation6], 0  ;;  %s452_s9 = smov 0   ;;  %s454_s10 = smov 0  }
   0x4   :  { %s456_s11 = smov 0   ;;  %s458_s12 = smov 0  }
   0x5 LB: > { %s471_s13 = sadd.s32 4294967295, %s431_s12   ;;  %p58_p0 = scmp.ne.s32.totalorder %s423_s10, %s419_s9  ;;  %s431_s12 = sphi %s458_s12, %s634_s12   ;;  %s427_s11 = sphi %s456_s11, %s633_s11   ;;  %s423_s10 = sphi %s454_s10, %s632_s10   ;;  %s419_s9 = sphi %s452_s9, %s631_s9  }
   0x6   : > { %p620_p1 = scmp.eq.s32.totalorder %s471_s13, 0  ;;  %p260_p2 = scmp.ge.s32.totalorder %s431_s12, 1 }
   0x7   : > { %p90_p3 = scmp.lt.s32.totalorder %s431_s12, 7  ;;  %s489_s16 = sadd.s32 1, %s431_s12  }
   0x8   : > { %p480_p5 = por %p620_p1, %p58_p0  ;;  %s42_s17 = ssub.s32 %s431_s12, %s489_s16 }
   0x9   : > { %p484_p6 = pnand %p260_p2, %p90_p3  ;;  %s45_s18 = sadd.s32 1, %s427_s11 }
   0xa   : > { %s622_s14 = scalar_select %p480_p5, 1, 0 }
   0xb   : > { %p286_p7 = pneg %p484_p6  ;;  %p502_p9 = scmp.eq.s32.totalorder %s42_s17, 0 }
   0xc   : > { %p52_p10 = scmp.ne.s32.totalorder %s427_s11, %s423_s10  ;;  %p53_p11 = scmp.eq.s32.totalorder %s431_s12, 0 }
   0xd   : > { %p498_p8 = pnand %p286_p7, %p620_p1  ;;  %p295_p12 = scmp.lt.s32.totalorder %s431_s12, 6 }
   0xe   : > { %s334_s23 = scalar_lea.hbm %s617_s0, 16 }
   0xf   : > { %p335_p13 = scmp.ne.s32.totalorder %s617_s0, %s334_s23  ;;  %p336_p0 = pneg %p498_p8 }
  0x10   : > { %p341_p7 = scmp.lt.u32.totalorder %s334_s23, %s617_s0 }
  0x11   : > { %p337_p2 = pnand %p336_p0, %p335_p13 }
  0x13   : > { %p338_p3 = pneg %p337_p2 }
  0x15   : > { %p343_p4 = pnand %p341_p7, %p338_p3 }
  0x17   : > { %346 = shalt.err (!%p343_p4)
}
  0x18   : > { %s433_s28 = smov [#allocation3]   ;;  %p54_p4 = por %p53_p11, %p52_p10 }
  0x19   : > { %289 = dma.hbm_to_smem (!%p498_p8), %s617_s0, 16, %s433_s28, [#allocation5]  }
  0x1a   : > { %s529_s3 = scalar_select %p502_p9, %s427_s11, %s45_s18  }
  0x1b   : > { %s112_s4 = sand.u32 1, %s427_s11   ;;  %s264_s6 = sshll.u32 %s431_s12, 7 }
  0x1c   : > { %s263_s5 = sshll.u32 %s112_s4, 3  ;;  %s541_s9 = scalar_lea.hbm %s618_s1, %s264_s6 }
  0x1d   : > { %s116_s17 = scalar_lea.vmem [#allocation7], %s263_s5  ;;  %p547_p8 = pnand %p295_p12, %p54_p4 }
  0x1e   : > { %s123_s19 = sshll.u32 %s116_s17, 4  ;;  %s113_s20 = scalar_lea.sflag [#allocation4], %s112_s4  ;;  %s543_s19 = int_to_ptr.vmem [resolvable:$true] %s123_s19 }
  0x1f   : > { %s347_s21 = scalar_lea.hbm %s541_s9, 128  ;;  %p349_p10 = pneg %p547_p8 }
  0x20   : > { %p348_p9 = scmp.ne.s32.totalorder %s541_s9, %s347_s21  ;;  %s352_s24 = scalar_lea.hbm %s618_s1, 768 }
  0x21   : > { %p353_p12 = scmp.lt.u32.totalorder %s541_s9, %s618_s1  ;;  %p354_p0 = scmp.lt.u32.totalorder %s352_s24, %s347_s21 }
  0x22   : > { %p350_p11 = pnand %p349_p10, %p348_p9  ;;  %p356_p3 = scmp.lt.u32.totalorder %s347_s21, %s541_s9 }
  0x23   : > { %p355_p2 = por %p354_p0, %p353_p12 }
  0x24   : > { %p351_p13 = pneg %p350_p11 }
  0x25   : > { %p357_p7 = por %p356_p3, %p355_p2 }
  0x27   : > { %p358_p4 = pnand %p357_p7, %p351_p13 }
  0x29   : > { %361 = shalt.err (!%p358_p4)
}
  0x2a   : > { %s362_s26 = scalar_lea.vmem %s543_s19, 128  ;;  %s434_s27 = smov [#allocation7]  }
  0x2b   : > { %p363_p9 = scmp.ne.s32.totalorder %s543_s19, %s362_s26  ;;  %s367_s28 = sshll.u32 %s434_s27, 4  ;;  %s368_s28 = int_to_ptr.vmem [resolvable:$false] %s367_s28 }
  0x2c   : > { %s369_s29 = scalar_lea.vmem %s368_s28, 256  ;;  %p370_p5 = scmp.lt.s32.totalorder %s543_s19, %s368_s28 }
  0x2d   : > { %p365_p11 = pnand %p363_p9, %p349_p10  ;;  %p371_p12 = scmp.lt.s32.totalorder %s369_s29, %s362_s26 }
  0x2f   : > { %p366_p1 = pneg %p365_p11  ;;  %p372_p0 = por %p371_p12, %p370_p5 }
  0x31   : > { %p373_p2 = pnand %p372_p0, %p366_p1 }
  0x33   : > { %376 = shalt.err (!%p373_p2)
}
  0x34   : > { %293 = dma.hbm_to_vmem [thread:$0]  (!%p547_p8), %s541_s9, 128, %s543_s19, %s113_s20  }
  0x35   : > { %132 = sbr.rel (%p484_p6) target bundleno = 315 (0x13b), region = 28  ;;  %p627_p10 = scmp.eq.s32.totalorder (!%p484_p6), %s471_s13, 0 }
  0x3c   : > { %406 = dma.done.wait (%p627_p10), [#allocation5], 16   ;;  %p628_p13 = pmov %p627_p10 }
  0x3d   : > { %s138_s30 = sand.u32 1, %s423_s10   ;;  %p629_p1 = scmp.ne.s32.totalorder %s622_s14, 0 }
  0x3e   : > { %408 = vsyncadd (%p628_p13), [#allocation5], 4294967280  ;;  %s267_s4 = sshll.u32 %s138_s30, 3  ;;  %s139_s5 = scalar_lea.sflag [#allocation4], %s138_s30 }
  0x3f   : > { %s142_s6 = scalar_lea.vmem [#allocation7], %s267_s4 }
  0x40   : > { %410 = dma.done.wait (%p629_p1), %s139_s5, 128  }
  0x41   : > { %412 = vsyncadd (%p629_p1), %s139_s5, 4294967168 }
  0x42   : > { %147 = sfence }
  0x43   : > { %p630_p5 = scmp.ne.s32.totalorder %s471_s13, 0 }
  0x44   : > { %v435_v0 = vmov (!%p630_p5), 0.0  }
  0x45   : > { %162 = sbr.rel (%p630_p5) target bundleno = 76 (0x4c), region = 40  ;;  %163 = vst [vmem:[#allocation2] sm:$0xff] (!%p630_p5), %v435_v0 }
  0x4c PF: > { %v164_v1 = vld [vmem:[%s142_s6] sm:$0xff]  ;;  %s170_s15 = sld [smem:[#allocation3 + %s471_s13]]  ;;  %v169_v5 = vld [vmem:[#allocation2] sm:$0xff]  ;;  %p269_p6 = scmp.ne.s32.totalorder %s471_s13, 5 }
  0x4d   : > { %v165_v2 = vand.u32 2147483647, %v164_v1 }
  0x4f   : > { %v166_v3 = vmul.f32 %v165_v2, %v165_v2 }
  0x51   : > { %v167_v4 = vmul.f32 %v166_v3, %v165_v2  ;;  %178 = sbr.rel (%p269_p6) target bundleno = 300 (0x12c), region = 44 }
  0x52   : > { %v171_v6 = vstv %s170_s15 }
  0x53   : > { %v172_v7 = vmul.f32 %v171_v6, %v167_v4 }
  0x55   : > { %v173_v8 = vadd.f32 %v172_v7, %v169_v5 }
  0x57   : > { %174 = vst [vmem:[#allocation2] sm:$0xff] %v173_v8 }
  0x5e   : > { %v179_v9 = vld [vmem:[#allocation2] sm:$0xff] }
  0x5f   : > { %180 = vadd.xlane.f32.xlu0 %v179_v9 }
  0xec   : > { %v181_v10 = vpop.xlane.xlu0 %180 }
  0xed   : > { %v182_v11 = vrot.slane %v181_v10, 4 }
  0xef   : > { %v183_v12 = vadd.f32 %v182_v11, %v181_v10 }
  0xf1   : > { %v184_v13 = vrot.slane %v183_v12, 2 }
  0xf3   : > { %v185_v14 = vadd.f32 %v184_v13, %v183_v12 }
  0xf5   : > { %v186_v15 = vrot.slane %v185_v14, 1 }
  0xf7   : > { %v187_v16 = vadd.f32 %v186_v15, %v185_v14 }
  0xf9   : > { %274 = vpush %v187_v16 }
 0x12a   : > { %s275_s14 = spop %274 }
 0x12b   : > { %190 = sst [smem:[#allocation8]] %s275_s14 }
 0x12c PF: > { %p297_p8 = scmp.eq.s32.totalorder %s471_s13, 5  ;;  %s377_s9 = scalar_lea.hbm %s619_s2, 16 }
 0x12d   : > { %p378_p3 = scmp.ne.s32.totalorder %s619_s2, %s377_s9  ;;  %p383_p9 = scmp.lt.u32.totalorder %s377_s9, %s619_s2 }
 0x12f   : > { %p379_p7 = pnand %p378_p3, %p297_p8 }
 0x131   : > { %p380_p4 = pneg %p379_p7 }
 0x133   : > { %p385_p11 = pnand %p383_p9, %p380_p4 }
 0x135   : > { %388 = shalt.err (!%p385_p11)
}
 0x136   : > { %s436_s21 = smov [#allocation8]  }
 0x137   : > { %283 = dma.smem_to_hbm (%p297_p8), %s436_s21, 16, %s619_s2, [#allocation6]  }
 0x138   : > { %414 = dma.done.wait (%p297_p8), [#allocation6], 16  }
 0x139   : > { %416 = vsyncadd (%p297_p8), [#allocation6], 4294967280 }
 0x13a   : > { %204 = sfence }
 0x13b PF: > { %p14_p12 = scmp.ge.s32.totalorder %s489_s16, 8   ;;  %s631_s9 = smov %s423_s10 }
 0x13c   : > { %s632_s10 = smov %s427_s11  ;;  %s633_s11 = smov %s529_s3 }
 0x13d   : > { %s634_s12 = smov %s489_s16  ;;  %16 = sbr.rel (!%p14_p12) target bundleno = 5 (0x5), region = 79 }
 0x144   :  { %210 = vsyncpa [#allocation4], 1 }
 0x145   :  { %212 = vsyncpa [#allocation4 + $0x1], 1 }
 0x146   :  { %213 = vsyncpa [#allocation5], 1 }
 0x147   :  { %215 = vsyncpa [#allocation5 + $0x1], 1 }
 0x148   :  { %216 = vsyncpa [#allocation6], 1 }
 0x149   :  { %218 = vsyncpa [#allocation6 + $0x1], 1 }

</bundles_post_ra>
